<compile_context>
chip_gen: v7x
topology: tpu7x:2x2x1
jax: 0.10.0
libtpu: 0.0.40
codegen_flags: <defaults>
</compile_context>

<pallas_src>
import jax
import jax.numpy as jnp
from jax.experimental import pallas as pl
from jax.experimental.pallas import tpu as pltpu


def _one_hot_kernel(t_ref, o_ref):
    # t_ref: (TILE_N, 1) int32, o_ref: (TILE_N, TILE_C) float32
    tn, tc = o_ref.shape
    c_off = pl.program_id(1) * tc
    class_ids = jax.lax.broadcasted_iota(jnp.int32, (tn, tc), 1) + c_off
    o_ref[...] = (class_ids == t_ref[...]).astype(o_ref.dtype)


def _round_up(x, m):
    return ((x + m - 1) // m) * m


def one_hot(target, num_classes):
    """Pallas equivalent of torch.nn.functional.one_hot(target, num_classes).float().

    target: integer array of arbitrary shape, values in [0, num_classes).
    returns: float32 array of shape target.shape + (num_classes,).
    """
    target = jnp.asarray(target, dtype=jnp.int32)
    orig_shape = target.shape
    n = 1
    for d in orig_shape:
        n *= d

    if n == 0:
        # Empty input -> empty output (torch returns an empty tensor too).
        return jnp.zeros(orig_shape + (num_classes,), dtype=jnp.float32)

    # --- layout / tiling choices -------------------------------------------
    # Lane-dense class axis: pad C up to a multiple of 128.
    c_padded = _round_up(max(num_classes, 1), 128)
    # Tile the class axis so vocab-scale num_classes still fits in VMEM.
    tile_c = min(c_padded, 512)
    # Tile the row axis: multiple of 8, big enough to amortize the ~0.35 us
    # per-grid-step overhead, small enough that each double-buffered output
    # tile (tile_n * tile_c * 4B) stays ~2 MiB.
    n_pad8 = _round_up(n, 8)
    tile_n = min(1024, n_pad8)
    n_padded = _round_up(n, tile_n)

    # Pad targets.  Padded rows get -1 (never matches a class); they are
    # sliced off afterwards anyway.
    t_flat = target.reshape(n, 1)
    if n_padded > n:
        t_flat = jnp.pad(t_flat, ((0, n_padded - n), (0, 0)),
                         constant_values=-1)

    grid = (n_padded // tile_n, c_padded // tile_c)

    out = pl.pallas_call(
        _one_hot_kernel,
        out_shape=jax.ShapeDtypeStruct((n_padded, c_padded), jnp.float32),
        grid_spec=pltpu.PrefetchScalarGridSpec(
            num_scalar_prefetch=0,
            grid=grid,
            # Target block: (tile_n, 1); last dim equals the full array dim,
            # second-to-last is a multiple of 8 -> satisfies (8,128).
            in_specs=[pl.BlockSpec((tile_n, 1), lambda i, j: (i, 0))],
            # Lane-dense output block, >= 128 wide -> full unmasked stores.
            out_specs=pl.BlockSpec((tile_n, tile_c), lambda i, j: (i, j)),
        ),
        compiler_params=pltpu.CompilerParams(
            dimension_semantics=("parallel", "parallel"),
        ),
        cost_estimate=pl.CostEstimate(
            flops=n * num_classes,
            transcendentals=0,
            bytes_accessed=n * 4 + n * num_classes * 4,
        ),
    )(t_flat)

    # Slice off row / class padding, restore the original leading shape.
    out = out[:n, :num_classes]
    return out.reshape(orig_shape + (num_classes,))


if __name__ == "__main__":
    key = jax.random.PRNGKey(0)

    # Case 1: batch=2, seq=8, num_classes=16 (small; exercises C padding to 128).
    num_classes = 16
    target = jax.random.randint(key, (2, 8), minval=0, maxval=num_classes,
                                dtype=jnp.int32)
    result = jax.block_until_ready(one_hot(target, num_classes))
    ref = jax.nn.one_hot(target, num_classes, dtype=jnp.float32)
    assert result.shape == target.shape + (num_classes,)
    assert result.dtype == jnp.float32
    assert jnp.allclose(result, ref)

    # Case 2: ragged N (3*5=15 rows -> padded to a multiple of 8) and C=10.
    num_classes2 = 10
    target2 = jax.random.randint(jax.random.PRNGKey(1), (3, 5), minval=0,
                                 maxval=num_classes2, dtype=jnp.int32)
    result2 = jax.block_until_ready(one_hot(target2, num_classes2))
    ref2 = jax.nn.one_hot(target2, num_classes2, dtype=jnp.float32)
    assert result2.shape == target2.shape + (num_classes2,)
    assert jnp.allclose(result2, ref2)

    # TODO(synk): torch.nn.functional.one_hot raises on out-of-range targets;
    # this kernel (like jax.nn.one_hot) silently emits an all-zero row instead.

    print("KERNEL_OK")
</pallas_src>

<mosaic_0001>
module attributes {stable_mosaic.version = 11 : i64} {
  func.func @_one_hot_kernel(%arg0: i32, %arg1: i32, %arg2: memref<16x1xi32, #tpu.memory_space<vmem>>, %arg3: memref<16x128xf32, #tpu.memory_space<vmem>>) attributes {dimension_semantics = [#tpu.dimension_semantics<parallel>, #tpu.dimension_semantics<parallel>], iteration_bounds = array<i64: 1, 1>, scalar_prefetch = 0 : i64, scratch_operands = 0 : i64, tpu.core_type = #tpu.core_type<tc>, window_params = [{transform_indices = @transform_0, window_bounds = array<i64: 16, 1>}, {transform_indices = @transform_1, window_bounds = array<i64: 16, 128>}]} {
    %c128_i32 = arith.constant 128 : i32
    %0 = arith.muli %arg1, %c128_i32 : i32
    %1 = tpu.iota {dimensions = array<i32: 1>} : vector<16x128xi32>
    %2 = vector.broadcast %0 : i32 to vector<16x128xi32>
    %3 = arith.addi %1, %2 : vector<16x128xi32>
    %c0 = arith.constant 0 : index
    %c0_0 = arith.constant 0 : index
    %4 = vector.load %arg2[%c0, %c0_0] : memref<16x1xi32, #tpu.memory_space<vmem>>, vector<16x1xi32>
    %5 = vector.broadcast %4 : vector<16x1xi32> to vector<16x128xi32>
    %6 = arith.cmpi eq, %3, %5 : vector<16x128xi32>
    %7 = arith.extui %6 : vector<16x128xi1> to vector<16x128xi32>
    %8 = arith.sitofp %7 : vector<16x128xi32> to vector<16x128xf32>
    %c0_1 = arith.constant 0 : index
    %c0_2 = arith.constant 0 : index
    %9 = vector.load %arg3[%c0_1, %c0_2] : memref<16x128xf32, #tpu.memory_space<vmem>>, vector<16x128xf32>
    tpu.vector_store %arg3[%c0_1, %c0_2], %8 {strides = array<i32>} : memref<16x128xf32, #tpu.memory_space<vmem>>, vector<16x128xf32>,
    return
  }
  func.func @transform_0(%arg0: i32, %arg1: i32) -> (i32, i32) {
    %c0_i32 = arith.constant 0 : i32
    %c0_i32_0 = arith.constant 0 : i32
    return %arg0, %c0_i32 : i32, i32
  }
  func.func @transform_1(%arg0: i32, %arg1: i32) -> (i32, i32) {
    %c0_i32 = arith.constant 0 : i32
    return %arg0, %arg1 : i32, i32
  }
}

</mosaic_0001>

<bundles_post_ra>
// kernel: tpu_custom_call.1
= control target key start
LH: loop header
LB: loop body
LE: loop exit
PB: predicated region body
PF: predicated region fallthrough
CT: control target
= control target key end

     0   :  { %s111_s0 = inlined_call_operand.vmem [shape: s32[16,1], index: 0, kind: input, shape index: {}]   ;;  %s112_s1 = inlined_call_operand.hbm [shape: f32[16,128], index: 1, kind: output, shape index: {}]  }
   0x1   :  { %v14_v0 = vld [vmem:[%s111_s0] sm:$0xff] }
   0x2   :  { %6 = vsyncpa [#allocation3], 0  ;;  %v78_v1 = vmov 0   ;;  %v15_v2 = vld [vmem:[%s111_s0 + $0x8] sm:$0xff]  ;;  %v10_v3 = vlaneseq  ;;  %s79_s10 = smov [#allocation2]   ;;  %v80_v6 = vmov 0.0  }
   0x3   :  { %53 = vset.pattern.permute.xlu0 %v78_v1  ;;  %s35_s11 = sshll.u32 %s79_s10, 4  ;;  %s36_s11 = int_to_ptr.vmem [resolvable:$true] %s35_s11 }
   0x4   :  { %17 = vperm.xlu0 %53, %v14_v0   ;;  %v11_v4 = vand.u32 127, %v10_v3  ;;  %s54_s12 = scalar_lea.vmem %s36_s11, 256  ;;  %p59_p1 = scmp.lt.s32.totalorder %s36_s11, %s36_s11 }
   0x5   :  { %p55_p0 = scmp.ne.s32.totalorder %s36_s11, %s54_s12  ;;  %p60_p2 = scmp.lt.s32.totalorder %s54_s12, %s54_s12 }
   0x7   :  { %p61_p3 = por %p60_p2, %p59_p1 }
   0x8   :  { %20 = vperm.xlu0 %53, %v15_v2  }
   0x9   :  { %p62_p4 = pnand %p61_p3, %p55_p0 }
  0x83   :  { %v18_v5 = vpop.permute.xlu0 %17 }
  0x84   :  { %vm22_vm0 = vcmp.eq.s32.totalorder %v11_v4, %v18_v5 }
  0x85   :  { %v46_v7 = vsel %vm22_vm0, 1.0, %v80_v6 }
  0x86   :  { %28 = vst [vmem:[#allocation2] sm:$0xff] %v46_v7 }
  0x87   :  { %v21_v8 = vpop.permute.xlu0 %20 }
  0x88   :  { %vm23_vm1 = vcmp.eq.s32.totalorder %v11_v4, %v21_v8 }
  0x89   :  { %v47_v9 = vsel %vm23_vm1, 1.0, %v80_v6 }
  0x8a   :  { %29 = vst [vmem:[#allocation2 + $0x8] sm:$0xff] %v47_v9 }
  0x8b   :  { %65 = shalt.err (!%p62_p4)
}
  0x8c   :  { %s66_s14 = scalar_lea.hbm %s112_s1, 256 }
  0x8d   :  { %p67_p5 = scmp.ne.s32.totalorder %s112_s1, %s66_s14  ;;  %p70_p6 = scmp.lt.u32.totalorder %s66_s14, %s112_s1 }
  0x8f   :  { %p72_p7 = pnand %p70_p6, %p67_p5 }
  0x91   :  { %75 = shalt.err (!%p72_p7)
}
  0x92   :  { %s81_s19 = smov 128   ;;  %s82_s20 = smov 8  }
  0x93   :  { %41 = dma.vmem_to_hbm [thread:$0]  %s36_s11, 256, %s112_s1, [#allocation3], %s81_s19, %s81_s19, %s82_s20  }
  0x94   :  { %76 = dma.done.wait [#allocation3], 256  }
  0x95   :  { %77 = vsyncadd [#allocation3], 4294967040 }
  0x96   :  { %45 = vsyncpa [#allocation3], 1 }

</bundles_post_ra>
